<compile_context>
chip_gen: v6e
topology: v6e:2x2x1
jax: 0.10.0
libtpu: 0.0.40
codegen_flags: <defaults>
</compile_context>

<pallas_src>
import jax
import jax.numpy as jnp
from jax import lax
from jax.experimental import pallas as pl
from jax.experimental.pallas import tpu as pltpu

_LANES = 128
_SUBLANES = 8


def _round_up(x, m):
    return ((x + m - 1) // m) * m


# ----------------------------------------------------------------------------
# Path 1: in_dim == out_dim == 1  ->  pure VPU FMA on a lane-dense slab.
# ----------------------------------------------------------------------------
def _scalar_fma_kernel(wb_ref, x_ref, o_ref):
    # wb_ref: SMEM f32[2] = [w, b]; x_ref/o_ref: (TILE_R, 128) VMEM tiles.
    w = wb_ref[0]
    b = wb_ref[1]
    o_ref[...] = (x_ref[...] * w + b).astype(o_ref.dtype)


def _scalar_linear_forward(x, w, b):
    """y = x * w + b for x of shape (N, 1), w (1,1), b (1,)."""
    n = x.shape[0]
    slab = _LANES * _SUBLANES                      # 1024-element (8, 128) granule
    n_pad = max(_round_up(n, slab), slab)
    x_flat = jnp.pad(x.reshape(-1), (0, n_pad - n))
    rows = n_pad // _LANES                         # multiple of 8 by construction
    x2d = x_flat.reshape(rows, _LANES)             # lane-dense layout

    # 1024 rows * 128 lanes * 4 B = 512 KiB per buffer; double-buffered x + y
    # ~= 2 MiB -> far under every generation's scoped-VMEM default (incl. v7x).
    tile_r = min(rows, 1024)
    grid = (pl.cdiv(rows, tile_r),)

    wb = jnp.stack([w.reshape(()), b.reshape(())]).astype(jnp.float32)  # (2,)

    out2d = pl.pallas_call(
        _scalar_fma_kernel,
        out_shape=jax.ShapeDtypeStruct((rows, _LANES), x.dtype),
        grid=grid,
        in_specs=[
            # Scalars in SMEM: no padded (8,128) VMEM tile, no per-step DMA.
            pl.BlockSpec(memory_space=pltpu.MemorySpace.SMEM),
            pl.BlockSpec((tile_r, _LANES), lambda i: (i, 0)),
        ],
        out_specs=pl.BlockSpec((tile_r, _LANES), lambda i: (i, 0)),
        compiler_params=pltpu.CompilerParams(
            dimension_semantics=("parallel",)),
    )(wb, x2d)

    return out2d.reshape(-1)[:n].reshape(n, 1)


# ----------------------------------------------------------------------------
# Path 2: general (in_dim, out_dim) linear, tiled over N with resident weights.
# ----------------------------------------------------------------------------
def _linear_kernel(x_ref, w_ref, b_ref, o_ref):
    # x_ref: (TILE_N, in_dim), w_ref: (out_dim, in_dim), b_ref: (1, out_dim).
    # Contract x dim 1 with w dim 1 directly (no in-kernel w.T / XLU transpose).
    y = lax.dot_general(
        x_ref[...], w_ref[...],
        dimension_numbers=(((1,), (1,)), ((), ())),
        preferred_element_type=jnp.float32,
    )
    o_ref[...] = (y + b_ref[...]).astype(o_ref.dtype)


def _general_linear_forward(x, w, b):
    """y = x @ w.T + b matching torch.nn.Linear; x (N, in), w (out, in), b (out,)."""
    n, in_dim = x.shape
    out_dim = w.shape[0]
    b2d = b.reshape(1, out_dim)

    # Row tile: multiple of 8 sublanes, capped so double-buffered x/y tiles plus
    # the resident W stay well under v7x's 64 MiB VMEM for small in/out dims.
    # TODO(synk): for very large in_dim add a K grid axis ("arbitrary") with a
    # VMEM f32 accumulator instead of one full-K contraction per tile.
    tile_n = min(_round_up(n, _SUBLANES), 512)
    grid = (pl.cdiv(n, tile_n),)

    return pl.pallas_call(
        _linear_kernel,
        out_shape=jax.ShapeDtypeStruct((n, out_dim), x.dtype),
        grid=grid,
        in_specs=[
            pl.BlockSpec((tile_n, in_dim), lambda i: (i, 0)),    # streamed x tiles
            pl.BlockSpec((out_dim, in_dim), lambda i: (0, 0)),   # W resident in VMEM
            pl.BlockSpec((1, out_dim), lambda i: (0, 0)),        # bias resident
        ],
        out_specs=pl.BlockSpec((tile_n, out_dim), lambda i: (i, 0)),
        compiler_params=pltpu.CompilerParams(
            dimension_semantics=("parallel",)),
    )(x, w, b2d)


# ----------------------------------------------------------------------------
# Module wrapper
# ----------------------------------------------------------------------------
class LinearRegressionModel:
    """JAX/Pallas port of the PyTorch LinearRegressionModel (nn.Linear forward)."""

    def __init__(self, in_dim, out_dim, key):
        # Deterministic init mimicking torch.nn.Linear: U(-1/sqrt(in), 1/sqrt(in))
        kw, kb = jax.random.split(key)
        bound = 1.0 / jnp.sqrt(jnp.float32(in_dim))
        self.weight = jax.random.uniform(
            kw, (out_dim, in_dim), jnp.float32, -bound, bound)
        self.bias = jax.random.uniform(
            kb, (out_dim,), jnp.float32, -bound, bound)

    def __call__(self, x):
        if self.weight.shape == (1, 1):
            # Degenerate scalar regression: skip the MXU entirely.
            return _scalar_linear_forward(x, self.weight, self.bias)
        return _general_linear_forward(x, self.weight, self.bias)


if __name__ == "__main__":
    key = jax.random.PRNGKey(0)
    k_x, k_p, k_x2, k_p2 = jax.random.split(key, 4)

    # --- Spec case: Linear(1, 1) applied to x.reshape(-1, 1) ---
    in_dim, out_dim, n = 1, 1, 8
    x = jax.random.normal(k_x, (n,), jnp.float32).reshape(-1, 1)   # (8, 1)
    model = LinearRegressionModel(in_dim, out_dim, k_p)
    y = jax.block_until_ready(model(x))
    y_ref = x @ model.weight.T + model.bias
    assert y.shape == (n, out_dim)
    assert jnp.allclose(y, y_ref, atol=1e-5, rtol=1e-5)

    # --- General-path sanity check (non-degenerate Linear) ---
    n2, in2, out2 = 16, 32, 8
    x2 = jax.random.normal(k_x2, (n2, in2), jnp.float32)
    model2 = LinearRegressionModel(in2, out2, k_p2)
    y2 = jax.block_until_ready(model2(x2))
    y2_ref = x2 @ model2.weight.T + model2.bias
    assert y2.shape == (n2, out2)
    assert jnp.allclose(y2, y2_ref, atol=1e-4, rtol=1e-4)

    print("KERNEL_OK")
</pallas_src>

<mosaic_0001>
module attributes {stable_mosaic.version = 11 : i64} {
  func.func @_scalar_fma_kernel(%arg0: i32, %arg1: memref<2xf32, #tpu.memory_space<smem>>, %arg2: memref<8x128xf32, #tpu.memory_space<vmem>>, %arg3: memref<8x128xf32, #tpu.memory_space<vmem>>) attributes {dimension_semantics = [#tpu.dimension_semantics<parallel>], iteration_bounds = array<i64: 1>, scalar_prefetch = 0 : i64, scratch_operands = 0 : i64, tpu.core_type = #tpu.core_type<tc>, window_params = [{transform_indices = @transform_0, window_bounds = array<i64: 2>}, {transform_indices = @transform_1, window_bounds = array<i64: 8, 128>}, {transform_indices = @transform_2, window_bounds = array<i64: 8, 128>}]} {
    %c0 = arith.constant 0 : index
    %0 = memref.load %arg1[%c0] : memref<2xf32, #tpu.memory_space<smem>>
    %c1 = arith.constant 1 : index
    %1 = memref.load %arg1[%c1] : memref<2xf32, #tpu.memory_space<smem>>
    %c0_0 = arith.constant 0 : index
    %c0_1 = arith.constant 0 : index
    %2 = vector.load %arg2[%c0_0, %c0_1] : memref<8x128xf32, #tpu.memory_space<vmem>>, vector<8x128xf32>
    %3 = vector.broadcast %0 : f32 to vector<8x128xf32>
    %4 = arith.mulf %2, %3 : vector<8x128xf32>
    %5 = vector.broadcast %1 : f32 to vector<8x128xf32>
    %6 = arith.addf %4, %5 : vector<8x128xf32>
    %c0_2 = arith.constant 0 : index
    %c0_3 = arith.constant 0 : index
    %7 = vector.load %arg3[%c0_2, %c0_3] : memref<8x128xf32, #tpu.memory_space<vmem>>, vector<8x128xf32>
    tpu.vector_store %arg3[%c0_2, %c0_3], %6 {strides = array<i32>} : memref<8x128xf32, #tpu.memory_space<vmem>>, vector<8x128xf32>,
    return
  }
  func.func @transform_0(%arg0: i32) -> i32 {
    %c0_i32 = arith.constant 0 : i32
    %c0_i32_0 = arith.constant 0 : i32
    return %c0_i32 : i32
  }
  func.func @transform_1(%arg0: i32) -> (i32, i32) {
    %c0_i32 = arith.constant 0 : i32
    %c0_i32_0 = arith.constant 0 : i32
    return %arg0, %c0_i32 : i32, i32
  }
  func.func @transform_2(%arg0: i32) -> (i32, i32) {
    %c0_i32 = arith.constant 0 : i32
    %c0_i32_0 = arith.constant 0 : i32
    return %arg0, %c0_i32 : i32, i32
  }
}

</mosaic_0001>

<bundles_post_ra>
// kernel: tpu_custom_call.1
= control target key start
LH: loop header
LB: loop body
LE: loop exit
PB: predicated region body
PF: predicated region fallthrough
CT: control target
= control target key end

     0   :  { %7 = vsyncpa [#allocation5], 0  ;;  %s144_s0 = inlined_call_operand.hbm [shape: f32[2], index: 0, kind: input, shape index: {}]   ;;  %s145_s1 = inlined_call_operand.hbm [shape: f32[8,128], index: 1, kind: input, shape index: {}]   ;;  %s146_s2 = inlined_call_operand.hbm [shape: f32[8,128], index: 2, kind: output, shape index: {}]  }
   0x1   :  { %8 = vsyncpa [#allocation3], 0 }
   0x2   :  { %9 = vsyncpa [#allocation4], 0  ;;  %s117_s9 = smov [#allocation2]   ;;  %s118_s12 = smov [#allocation6]  }
   0x3   :  { %17 = dma.hbm_to_smem %s144_s0, 16, %s117_s9, [#allocation5]  }
   0x4   :  { %s24_s13 = sshll.u32 %s118_s12, 4  ;;  %s25_s13 = int_to_ptr.vmem [resolvable:$true] %s24_s13 }
   0x5   :  { %s79_s14 = scalar_lea.vmem %s25_s13, 128  ;;  %p84_p1 = scmp.lt.s32.totalorder %s25_s13, %s25_s13 }
   0x6   :  { %p80_p0 = scmp.ne.s32.totalorder %s25_s13, %s79_s14  ;;  %p85_p2 = scmp.lt.s32.totalorder %s79_s14, %s79_s14 }
   0x8   :  { %p86_p3 = por %p85_p2, %p84_p1 }
   0xa   :  { %p87_p4 = pnand %p86_p3, %p80_p0 }
   0xc   :  { %90 = shalt.err (!%p87_p4)
}
   0xd   :  { %27 = dma.hbm_to_vmem [thread:$0]  %s145_s1, 128, %s25_s13, [#allocation3]  }
   0xe   :  { %111 = dma.done.wait [#allocation5], 16  }
   0xf   :  { %112 = vsyncadd [#allocation5], 4294967280 }
  0x10   :  { %113 = dma.done.wait [#allocation3], 128  }
  0x11   :  { %114 = vsyncadd [#allocation3], 4294967168 }
  0x12   :  { %34 = sfence }
  0x13   :  { %s35_s0 = sld [smem:[#allocation2]]  ;;  %v37_v0 = vld [vmem:[#allocation6] sm:$0xff]  ;;  %s119_s18 = smov [#allocation7]  }
  0x14   :  { %s59_s17 = sld [smem:[#allocation2 + $0x1]]  ;;  %s49_s19 = sshll.u32 %s119_s18, 4  ;;  %s50_s19 = int_to_ptr.vmem [resolvable:$true] %s49_s19 }
  0x15   :  { %s91_s20 = scalar_lea.vmem %s50_s19, 128  ;;  %p96_p6 = scmp.lt.s32.totalorder %s50_s19, %s50_s19 }
  0x16   :  { %p92_p5 = scmp.ne.s32.totalorder %s50_s19, %s91_s20  ;;  %p97_p7 = scmp.lt.s32.totalorder %s91_s20, %s91_s20 }
  0x18   :  { %p98_p8 = por %p97_p7, %p96_p6 }
  0x19   :  { %v38_v1 = vstv %s35_s0 }
  0x1a   :  { %v39_v2 = vmul.f32 %v38_v1, %v37_v0  ;;  %v40_v3 = vstv %s59_s17  ;;  %p99_p9 = pnand %p98_p8, %p92_p5 }
  0x1c   :  { %v41_v4 = vadd.f32 %v40_v3, %v39_v2 }
  0x1e   :  { %42 = vst [vmem:[#allocation7] sm:$0xff] %v41_v4 }
  0x1f   :  { %102 = shalt.err (!%p99_p9)
}
  0x20   :  { %52 = dma.vmem_to_hbm [thread:$0]  %s50_s19, 128, %s146_s2, [#allocation4]  }
  0x21   :  { %115 = dma.done.wait [#allocation4], 128  }
  0x22   :  { %116 = vsyncadd [#allocation4], 4294967168 }
  0x23   :  { %56 = vsyncpa [#allocation3], 1 }
  0x24   :  { %57 = vsyncpa [#allocation4], 1 }
  0x25   :  { %58 = vsyncpa [#allocation5], 1 }

</bundles_post_ra>
